<compile_context>
chip_gen: v6e
topology: v6e:2x2x1
jax: 0.10.0
libtpu: 0.0.40
codegen_flags: <defaults>
</compile_context>

<pallas_src>
import jax
import jax.numpy as jnp
from jax.experimental import pallas as pl
from jax.experimental.pallas import tpu as pltpu


def _round_up(x, m):
    return ((x + m - 1) // m) * m


def actor_kernel(x_ref, w1_ref, b1_ref, w2_ref, b2_ref, out_ref):
    # x: (TB, S) f32; w1: (S, H) bf16; b1: (1, H) f32; w2: (H, A) bf16; b2: (1, A) f32.
    # Cast the streamed batch tile to the MXU dtype inside the kernel (cheap VPU pack,
    # hidden under the input DMA); accumulate in f32.
    x = x_ref[...].astype(w1_ref.dtype)

    h = jnp.dot(x, w1_ref[...], preferred_element_type=jnp.float32) + b1_ref[...]
    h = jnp.maximum(h, 0.0)

    logits = jnp.dot(h.astype(w2_ref.dtype), w2_ref[...],
                     preferred_element_type=jnp.float32) + b2_ref[...]

    # Numerically stable softmax over dim=1 (last axis).
    m = jnp.max(logits, axis=-1, keepdims=True)
    e = jnp.exp(logits - m)
    denom = jnp.sum(e, axis=-1, keepdims=True)
    inv = pl.reciprocal(denom, approx=True)      # EUP vrcp (free slot)
    inv = inv * (2.0 - denom * inv)              # one Newton step -> ~f32-exact reciprocal
    out_ref[...] = (e * inv).astype(out_ref.dtype)


def prepare_params(w1, b1, w2, b2, *, use_bf16=True):
    """One-time parameter prep (cast / reshape) hoisted out of the forward path.

    Weights are stored (in_features, out_features) == transpose of PyTorch's (out, in).
    """
    mm_dtype = jnp.bfloat16 if use_bf16 else jnp.float32
    w1p = w1.astype(mm_dtype)
    w2p = w2.astype(mm_dtype)
    b1p = b1.reshape(1, -1).astype(jnp.float32)
    b2p = b2.reshape(1, -1).astype(jnp.float32)
    return w1p, b1p, w2p, b2p


def actor_forward(state, params, *, tile_b=1024):
    """state: (B, S) f32; params from prepare_params  ->  (B, A) probabilities (f32)."""
    w1, b1, w2, b2 = params
    B, S = state.shape
    H = w1.shape[1]
    A = w2.shape[1]

    # Batch tiling: TB multiple of 8 (f32 sublane); pad batch only if needed.
    TB = min(tile_b, _round_up(B, 8))
    B_pad = _round_up(B, TB)
    x = state if B_pad == B else jnp.pad(state, ((0, B_pad - B), (0, 0)))

    out = pl.pallas_call(
        actor_kernel,
        out_shape=jax.ShapeDtypeStruct((B_pad, A), jnp.float32),
        grid=(B_pad // TB,),
        in_specs=[
            pl.BlockSpec((TB, S), lambda i: (i, 0)),   # streamed batch tile (f32)
            pl.BlockSpec((S, H), lambda i: (0, 0)),    # weights: resident across tiles
            pl.BlockSpec((1, H), lambda i: (0, 0)),
            pl.BlockSpec((H, A), lambda i: (0, 0)),
            pl.BlockSpec((1, A), lambda i: (0, 0)),
        ],
        out_specs=pl.BlockSpec((TB, A), lambda i: (i, 0)),
        compiler_params=pltpu.CompilerParams(
            dimension_semantics=("parallel",),         # split batch tiles across TCs (v7x)
        ),
    )(x, w1, b1, w2, b2)

    return out if B_pad == B else out[:B]


def init_params(key, state_dim, hidden_dim, action_dim):
    """Deterministic init mirroring nn.Linear's U(-1/sqrt(fan_in), 1/sqrt(fan_in))."""
    k1, k2, k3, k4 = jax.random.split(key, 4)
    lim1 = 1.0 / jnp.sqrt(jnp.float32(state_dim))
    lim2 = 1.0 / jnp.sqrt(jnp.float32(hidden_dim))
    # stored as (in, out) == transpose of PyTorch's (out, in)
    w1 = jax.random.uniform(k1, (state_dim, hidden_dim), jnp.float32, -lim1, lim1)
    b1 = jax.random.uniform(k2, (hidden_dim,), jnp.float32, -lim1, lim1)
    w2 = jax.random.uniform(k3, (hidden_dim, action_dim), jnp.float32, -lim2, lim2)
    b2 = jax.random.uniform(k4, (action_dim,), jnp.float32, -lim2, lim2)
    return w1, b1, w2, b2


def ref_forward(state, w1, b1, w2, b2, *, use_bf16=True):
    """Plain-JAX reference mirroring the kernel's precision scheme."""
    mm_dtype = jnp.bfloat16 if use_bf16 else jnp.float32
    h = jnp.dot(state.astype(mm_dtype), w1.astype(mm_dtype),
                preferred_element_type=jnp.float32) + b1
    h = jnp.maximum(h, 0.0)
    logits = jnp.dot(h.astype(mm_dtype), w2.astype(mm_dtype),
                     preferred_element_type=jnp.float32) + b2
    return jax.nn.softmax(logits, axis=1)


if __name__ == "__main__":
    key = jax.random.PRNGKey(0)
    k_state, k_params, k_big = jax.random.split(key, 3)

    batch, state_dim, hidden_dim, action_dim = 2, 8, 32, 4
    state = jax.random.normal(k_state, (batch, state_dim), jnp.float32)
    w1, b1, w2, b2 = init_params(k_params, state_dim, hidden_dim, action_dim)

    # One-time parameter prep (hoisted out of the forward path).
    params = prepare_params(w1, b1, w2, b2)

    # --- small (module-sized) batch ---
    probs = actor_forward(state, params)
    probs = jax.block_until_ready(probs)

    assert probs.shape == (batch, action_dim)
    assert jnp.allclose(jnp.sum(probs, axis=1), 1.0, atol=1e-4)
    ref = ref_forward(state, w1, b1, w2, b2)
    assert jnp.allclose(probs, ref, atol=2e-3), float(jnp.max(jnp.abs(probs - ref)))

    # --- large batch: exercises the multi-tile grid / resident-weight path ---
    big_batch = 4096
    big_state = jax.random.normal(k_big, (big_batch, state_dim), jnp.float32)
    big_probs = jax.block_until_ready(actor_forward(big_state, params, tile_b=1024))
    assert big_probs.shape == (big_batch, action_dim)
    assert jnp.allclose(jnp.sum(big_probs, axis=1), 1.0, atol=1e-4)
    big_ref = ref_forward(big_state, w1, b1, w2, b2)
    assert jnp.allclose(big_probs, big_ref, atol=2e-3)

    print("KERNEL_OK")
</pallas_src>

<mosaic_0001>
module attributes {stable_mosaic.version = 11 : i64} {
  func.func @actor_kernel(%arg0: i32, %arg1: memref<8x8xf32, #tpu.memory_space<vmem>>, %arg2: memref<8x32xbf16, #tpu.memory_space<vmem>>, %arg3: memref<1x32xf32, #tpu.memory_space<vmem>>, %arg4: memref<32x4xbf16, #tpu.memory_space<vmem>>, %arg5: memref<1x4xf32, #tpu.memory_space<vmem>>, %arg6: memref<8x4xf32, #tpu.memory_space<vmem>>) attributes {dimension_semantics = [#tpu.dimension_semantics<parallel>], iteration_bounds = array<i64: 1>, scalar_prefetch = 0 : i64, scratch_operands = 0 : i64, tpu.core_type = #tpu.core_type<tc>, window_params = [{transform_indices = @transform_0, window_bounds = array<i64: 8, 8>}, {pipeline_mode = #tpu.pipeline_mode<synchronous>, transform_indices = @transform_1, window_bounds = array<i64: 8, 32>}, {pipeline_mode = #tpu.pipeline_mode<synchronous>, transform_indices = @transform_2, window_bounds = array<i64: 1, 32>}, {pipeline_mode = #tpu.pipeline_mode<synchronous>, transform_indices = @transform_3, window_bounds = array<i64: 32, 4>}, {pipeline_mode = #tpu.pipeline_mode<synchronous>, transform_indices = @transform_4, window_bounds = array<i64: 1, 4>}, {transform_indices = @transform_5, window_bounds = array<i64: 8, 4>}]} {
    %c0 = arith.constant 0 : index
    %c0_0 = arith.constant 0 : index
    %0 = vector.load %arg1[%c0, %c0_0] : memref<8x8xf32, #tpu.memory_space<vmem>>, vector<8x8xf32>
    %1 = arith.truncf %0 : vector<8x8xf32> to vector<8x8xbf16>
    %c0_1 = arith.constant 0 : index
    %c0_2 = arith.constant 0 : index
    %2 = vector.load %arg2[%c0_1, %c0_2] : memref<8x32xbf16, #tpu.memory_space<vmem>>, vector<8x32xbf16>
    %cst = arith.constant dense<0.000000e+00> : vector<8x32xf32>
    %3 = tpu.matmul %1, %2, %cst {dimension_numbers = #tpu.dot_dimension_numbers<[1], [0], [0], [1], [0, 0, 1, 1], [], []>} : vector<8x8xbf16>, vector<8x32xbf16>, vector<8x32xf32> -> vector<8x32xf32>
    %c0_3 = arith.constant 0 : index
    %c0_4 = arith.constant 0 : index
    %4 = vector.load %arg3[%c0_3, %c0_4] : memref<1x32xf32, #tpu.memory_space<vmem>>, vector<1x32xf32>
    %5 = vector.broadcast %4 : vector<1x32xf32> to vector<8x32xf32>
    %6 = arith.addf %3, %5 : vector<8x32xf32>
    %cst_5 = arith.constant 0.000000e+00 : f32
    %7 = vector.broadcast %cst_5 : f32 to vector<8x32xf32>
    %8 = arith.maximumf %6, %7 : vector<8x32xf32>
    %9 = arith.truncf %8 : vector<8x32xf32> to vector<8x32xbf16>
    %c0_6 = arith.constant 0 : index
    %c0_7 = arith.constant 0 : index
    %10 = vector.load %arg4[%c0_6, %c0_7] : memref<32x4xbf16, #tpu.memory_space<vmem>>, vector<32x4xbf16>
    %cst_8 = arith.constant dense<0.000000e+00> : vector<8x4xf32>
    %11 = tpu.matmul %9, %10, %cst_8 {dimension_numbers = #tpu.dot_dimension_numbers<[1], [0], [0], [1], [0, 0, 1, 1], [], []>} : vector<8x32xbf16>, vector<32x4xbf16>, vector<8x4xf32> -> vector<8x4xf32>
    %c0_9 = arith.constant 0 : index
    %c0_10 = arith.constant 0 : index
    %12 = vector.load %arg5[%c0_9, %c0_10] : memref<1x4xf32, #tpu.memory_space<vmem>>, vector<1x4xf32>
    %13 = vector.broadcast %12 : vector<1x4xf32> to vector<8x4xf32>
    %14 = arith.addf %11, %13 : vector<8x4xf32>
    %cst_11 = arith.constant dense<0xFF800000> : vector<8xf32>
    %15 = vector.multi_reduction <maximumf>, %14, %cst_11 [1] : vector<8x4xf32> to vector<8xf32>
    %16 = vector.shape_cast %15 : vector<8xf32> to vector<8x1xf32>
    %17 = vector.broadcast %16 : vector<8x1xf32> to vector<8x4xf32>
    %18 = arith.subf %14, %17 : vector<8x4xf32>
    %19 = math.exp %18 : vector<8x4xf32>
    %cst_12 = arith.constant dense<0.000000e+00> : vector<8xf32>
    %20 = vector.multi_reduction <add>, %19, %cst_12 [1] : vector<8x4xf32> to vector<8xf32>
    %21 = vector.shape_cast %20 : vector<8xf32> to vector<8x1xf32>
    %22 = tpu.reciprocal %21 {approx = true} : vector<8x1xf32> -> vector<8x1xf32>
    %23 = arith.mulf %21, %22 : vector<8x1xf32>
    %cst_13 = arith.constant 2.000000e+00 : f32
    %24 = vector.broadcast %cst_13 : f32 to vector<8x1xf32>
    %25 = arith.subf %24, %23 : vector<8x1xf32>
    %26 = arith.mulf %22, %25 : vector<8x1xf32>
    %27 = vector.broadcast %26 : vector<8x1xf32> to vector<8x4xf32>
    %28 = arith.mulf %19, %27 : vector<8x4xf32>
    %c0_14 = arith.constant 0 : index
    %c0_15 = arith.constant 0 : index
    %29 = vector.load %arg6[%c0_14, %c0_15] : memref<8x4xf32, #tpu.memory_space<vmem>>, vector<8x4xf32>
    tpu.vector_store %arg6[%c0_14, %c0_15], %28 {strides = array<i32>} : memref<8x4xf32, #tpu.memory_space<vmem>>, vector<8x4xf32>,
    return
  }
  func.func @transform_0(%arg0: i32) -> (i32, i32) {
    %c0_i32 = arith.constant 0 : i32
    %c0_i32_0 = arith.constant 0 : i32
    return %arg0, %c0_i32 : i32, i32
  }
  func.func @transform_1(%arg0: i32) -> (i32, i32) {
    %c0_i32 = arith.constant 0 : i32
    %c0_i32_0 = arith.constant 0 : i32
    %c0_i32_1 = arith.constant 0 : i32
    return %c0_i32, %c0_i32_0 : i32, i32
  }
  func.func @transform_2(%arg0: i32) -> (i32, i32) {
    %c0_i32 = arith.constant 0 : i32
    %c0_i32_0 = arith.constant 0 : i32
    %c0_i32_1 = arith.constant 0 : i32
    return %c0_i32, %c0_i32_0 : i32, i32
  }
  func.func @transform_3(%arg0: i32) -> (i32, i32) {
    %c0_i32 = arith.constant 0 : i32
    %c0_i32_0 = arith.constant 0 : i32
    %c0_i32_1 = arith.constant 0 : i32
    return %c0_i32, %c0_i32_0 : i32, i32
  }
  func.func @transform_4(%arg0: i32) -> (i32, i32) {
    %c0_i32 = arith.constant 0 : i32
    %c0_i32_0 = arith.constant 0 : i32
    %c0_i32_1 = arith.constant 0 : i32
    return %c0_i32, %c0_i32_0 : i32, i32
  }
  func.func @transform_5(%arg0: i32) -> (i32, i32) {
    %c0_i32 = arith.constant 0 : i32
    %c0_i32_0 = arith.constant 0 : i32
    return %arg0, %c0_i32 : i32, i32
  }
}

</mosaic_0001>

<bundles_post_ra>
// kernel: tpu_custom_call.1
= control target key start
LH: loop header
LB: loop body
LE: loop exit
PB: predicated region body
PF: predicated region fallthrough
CT: control target
= control target key end

     0   :  { %vm35_vm0 = vcmask 1043456   ;;  %v201_v0 = vmov 0.0   ;;  %vm202_vm1 = vmmov 0   ;;  %vm31_vm2 = vcmask 64512   ;;  %s257_s1 = inlined_call_operand.vmem [shape: bf16[8,32], index: 1, kind: input, shape index: {}]   ;;  %s258_s0 = inlined_call_operand.vmem [shape: f32[8,8], index: 0, kind: input, shape index: {}]   ;;  %s259_s3 = inlined_call_operand.vmem [shape: bf16[32,4], index: 3, kind: input, shape index: {}]   ;;  %s260_s2 = inlined_call_operand.vmem [shape: f32[1,32], index: 2, kind: input, shape index: {}]   ;;  %s261_s4 = inlined_call_operand.vmem [shape: f32[1,4], index: 4, kind: input, shape index: {}]   ;;  %s262_s5 = inlined_call_operand.vmem [shape: f32[8,4], index: 5, kind: output, shape index: {}]  }
   0x1   :  { %179 = vmatprep.subr.bf16.mxu0 %v201_v0  ;;  %v23_v1 = vld [vmem:[%s257_s1] sm:$0xf]  ;;  %181 = vmatprep.mubr.msk.bf16.mxu0 %vm202_vm1, %v201_v0  ;;  %v195_v5 = vld [vmem:[%s259_s3 + $0x8] sm:$0xff]   ;;  %vm104_vm3 = vcmask 261120   ;;  %vm148_vm4 = vcmask 31744  }
   0x2   :  { %v21_v2 = vld [vmem:[%s258_s0] sm:$0xff]  ;;  %v37_v3 = vsel %vm35_vm0, %v23_v1, 0  ;;  %185 = vmatprep.subr.bf16.mxu1 %v201_v0  ;;  %189 = vmatprep.mubr.msk.bf16.mxu1 %vm202_vm1, %v201_v0 }
   0x3   :  { %v22_v4 = vpack.c.bf16 %v21_v2, %v21_v2  ;;  %180 = vmatpush3.bf16.msra.mxu0 %v37_v3  ;;  %186 = vmatpush3.bf16.msra.mxu1 %v195_v5  ;;  %v196_v6 = vld [vmem:[%s259_s3] sm:$0xff]  }
   0x4   :  { %187 = vmatprep.subr.bf16.mxu1 %v201_v0  ;;  %v168_v7 = vld [vmem:[%s260_s2] ss:$0 sm:$0xff] }
   0x5   :  { %v170_v15 = vld [vmem:[%s261_s4] ss:$0 sm:$0xff] }
   0x6   :  { %182 = vmatmul.mubr.msk.bf16.vlgmr.msra.gmra.mxu0 %vm31_vm2, %v22_v4 }
   0x7   :  { %188 = vmatpush3.bf16.msra.mxu1 %v196_v6 }
  0xc6   :  { %v73_v8 = vpop.f32.mrf.mxu0 }
  0xc7   :  { %v74_v9 = vadd.f32 %v168_v7, %v73_v8 }
  0xc8   :  { %v183_v10 = vpop.f32.mrf.mxu0 }
  0xc9   :  { %v79_v11 = vmax.f32 %v74_v9, 0.0 }
  0xca   :  { %v76_v12 = vpop.f32.mrf.mxu0 }
  0xcb   :  { %v80_v13 = vpack.c.bf16 %v79_v11, %v79_v11 }
  0xcc   :  { %v184_v14 = vpop.f32.mrf.mxu0 }
  0xcd   :  { %190 = vmatmul.mubr.msk.bf16.vlgmr.msra.gmra.mxu1 %vm104_vm3, %v80_v13 }
 0x18d   :  { %v142_v16 = vpop.f32.mrf.mxu1 }
 0x18e   :  { %v143_v17 = vadd.f32 %v170_v15, %v142_v16 }
 0x18f   :  { %v191_v18 = vpop.f32.mrf.mxu1 }
 0x190   :  { %v149_v19 = vsel %vm148_vm4, %v143_v17, -inf }
 0x191   :  { %150 = vmax.xlane.f32.xlu0 %v149_v19  ;;  %v145_v20 = vpop.f32.mrf.mxu1 }
 0x193   :  { %v192_v21 = vpop.f32.mrf.mxu1 }
 0x21a   :  { %v151_v22 = vpop.xlane.xlu0 %150 }
 0x21b   :  { %v152_v23 = vsub.f32 %v143_v17, %v151_v22 }
 0x21d   :  { %v153_v24 = vmul.f32 1.442695, %v152_v23 }
 0x21f   :  { %197 = vpow2.f32 %v153_v24 }
 0x22c   :  { %v198_v25 = vpop.eup %197 }
 0x22d   :  { %v155_v26 = vsel %vm148_vm4, %v198_v25, 0.0 }
 0x22e   :  { %156 = vadd.xlane.f32.xlu0 %v155_v26 }
 0x2b7   :  { %v157_v27 = vpop.xlane.xlu0 %156 }
 0x2b8   :  { %199 = vrcp.f32 %v157_v27 }
 0x2c5   :  { %v200_v28 = vpop.eup %199 }
 0x2c6   :  { %v159_v29 = vmul.f32 %v200_v28, %v157_v27 }
 0x2c8   :  { %v160_v30 = vsub.f32 2.0, %v159_v29 }
 0x2ca   :  { %v161_v31 = vmul.f32 %v200_v28, %v160_v30 }
 0x2cc   :  { %v162_v32 = vmul.f32 %v198_v25, %v161_v31 }
 0x2ce   :  { %163 = vst.msk [vmem:[%s262_s5] sm:$0xff] %vm148_vm4, %v162_v32 }

</bundles_post_ra>
